<compile_context>
chip_gen: v6e
topology: v6e:2x2x1
jax: 0.10.0
libtpu: 0.0.40
codegen_flags: <defaults>
</compile_context>

<pallas_src>
import functools

import jax
import jax.numpy as jnp
from jax.experimental import pallas as pl
from jax.experimental.pallas import tpu as pltpu


def _round_up(n, m):
    return ((n + m - 1) // m) * m


def dual_gru_kernel(x_ref, s_ref, h_ref,
                    wi_ref, ws_ref, wh_rz_ref, wh_n_ref,
                    bi_ref, bs_ref, bh_rz_ref, bh_n_ref,
                    out_ref, *, hid):
    """One batch tile of the DualInputGRUCell forward. `hid` = padded hidden."""
    f32 = jnp.float32
    wdt = wi_ref.dtype                       # MXU operand dtype (f32 or bf16)
    x = x_ref[...].astype(wdt)
    s = s_ref[...].astype(wdt)
    h = h_ref[...]
    hf = h.astype(f32)

    # --- fused, independent projections (3 MXU dots) ----------------------
    gx = jnp.dot(x, wi_ref[...], preferred_element_type=f32) + bi_ref[...].astype(f32)      # (TM, 3H)
    gs = jnp.dot(s, ws_ref[...], preferred_element_type=f32) + bs_ref[...].astype(f32)      # (TM, 3H)
    gh = jnp.dot(h.astype(wdt), wh_rz_ref[...], preferred_element_type=f32) \
        + bh_rz_ref[...].astype(f32)                                                        # (TM, 2H)

    hr = gh[:, 0 * hid:1 * hid]
    hz = gh[:, 1 * hid:2 * hid]

    # --- r / z gates (EUP sigmoids overlap with MXU drain) -----------------
    r = 0.5 * (jax.nn.sigmoid(gx[:, 0 * hid:1 * hid] + hr)
               + jax.nn.sigmoid(gs[:, 0 * hid:1 * hid] + hr))
    z = 0.5 * (jax.nn.sigmoid(gx[:, 1 * hid:2 * hid] + hz)
               + jax.nn.sigmoid(gs[:, 1 * hid:2 * hid] + hz))

    # --- single dependent dot: hidden_n(r * hidden) ------------------------
    rh = (r * hf).astype(wdt)
    hn = jnp.dot(rh, wh_n_ref[...], preferred_element_type=f32) + bh_n_ref[...].astype(f32)  # (TM, H)

    n = jnp.tanh(gx[:, 2 * hid:3 * hid] + gs[:, 2 * hid:3 * hid] + hn)

    out_ref[...] = ((1.0 - z) * n + z * hf).astype(out_ref.dtype)


@functools.partial(jax.jit, static_argnames=("block_m",))
def dual_input_gru_cell(x, seq_x, hidden, packed, *, block_m=256):
    """Forward of DualInputGRUCell. `packed` = output of pack_params()."""
    batch, _ = x.shape
    hid = hidden.shape[1]
    in_pad = packed["Wi"].shape[0]
    hid_pad = packed["Wh_n"].shape[0]

    tm = min(block_m, _round_up(batch, 8))          # batch tile (multiple of 8)
    b_pad = _round_up(batch, tm)
    nt = b_pad // tm

    def pad2(a, rows, cols):
        return jnp.zeros((rows, cols), a.dtype).at[:a.shape[0], :a.shape[1]].set(a)

    xp = pad2(x, b_pad, in_pad)
    sp = pad2(seq_x, b_pad, in_pad)
    hp = pad2(hidden, b_pad, hid_pad)

    act_spec_in = pl.BlockSpec((tm, in_pad), lambda i: (i, 0))
    act_spec_hid = pl.BlockSpec((tm, hid_pad), lambda i: (i, 0))

    def resident(arr):
        # whole array every grid step -> stays VMEM-resident across the grid
        return pl.BlockSpec(arr.shape, lambda i: (0, 0))

    kernel = functools.partial(dual_gru_kernel, hid=hid_pad)

    out = pl.pallas_call(
        kernel,
        grid=(nt,),
        in_specs=[
            act_spec_in, act_spec_in, act_spec_hid,
            resident(packed["Wi"]), resident(packed["Ws"]),
            resident(packed["Wh_rz"]), resident(packed["Wh_n"]),
            resident(packed["bi"]), resident(packed["bs"]),
            resident(packed["bh_rz"]), resident(packed["bh_n"]),
        ],
        out_specs=pl.BlockSpec((tm, hid_pad), lambda i: (i, 0)),
        out_shape=jax.ShapeDtypeStruct((b_pad, hid_pad), hidden.dtype),
        compiler_params=pltpu.CompilerParams(
            dimension_semantics=("parallel",),          # shard batch across TCs (v7x)
            vmem_limit_bytes=48 * 1024 * 1024,          # explicit budget (v7x: 64 MiB phys)
        ),
    )(xp, sp, hp,
      packed["Wi"], packed["Ws"], packed["Wh_rz"], packed["Wh_n"],
      packed["bi"], packed["bs"], packed["bh_rz"], packed["bh_n"])

    return out[:batch, :hid]


# ---------------------------------------------------------------------------
# Parameter construction / packing
# ---------------------------------------------------------------------------
def init_params(key, input_size, hidden_size, dtype=jnp.float32):
    """Per-gate weights, PyTorch-Linear-equivalent init, stored as (in, out)."""
    keys = jax.random.split(key, 18)
    ki = iter(keys)

    def linear(fan_in, fan_out):
        bound = 1.0 / (fan_in ** 0.5)
        w = jax.random.uniform(next(ki), (fan_in, fan_out), dtype, -bound, bound)
        b = jax.random.uniform(next(ki), (fan_out,), dtype, -bound, bound)
        return w, b

    p = {}
    for name, fan_in in (("i", input_size), ("s", input_size), ("h", hidden_size)):
        for gate in ("r", "z", "n"):
            w, b = linear(fan_in, hidden_size)
            p[f"w{name}_{gate}"] = w
            p[f"b{name}_{gate}"] = b
    return p


def pack_params(p, input_size, hidden_size, dtype=jnp.float32):
    """Fuse per-gate Linears into wide lane-padded matrices for the kernel."""
    in_pad = _round_up(input_size, 128)
    hid_pad = _round_up(hidden_size, 128)

    def pad_w(w):
        return jnp.zeros((in_pad if w.shape[0] == input_size else hid_pad, hid_pad),
                         dtype).at[:w.shape[0], :w.shape[1]].set(w.astype(dtype))

    def pad_b(b):
        return jnp.zeros((hid_pad,), dtype).at[:b.shape[0]].set(b.astype(dtype))

    return {
        "Wi": jnp.concatenate([pad_w(p["wi_r"]), pad_w(p["wi_z"]), pad_w(p["wi_n"])], axis=1),
        "Ws": jnp.concatenate([pad_w(p["ws_r"]), pad_w(p["ws_z"]), pad_w(p["ws_n"])], axis=1),
        "Wh_rz": jnp.concatenate([pad_w(p["wh_r"]), pad_w(p["wh_z"])], axis=1),
        "Wh_n": pad_w(p["wh_n"]),
        "bi": jnp.concatenate([pad_b(p["bi_r"]), pad_b(p["bi_z"]), pad_b(p["bi_n"])])[None, :],
        "bs": jnp.concatenate([pad_b(p["bs_r"]), pad_b(p["bs_z"]), pad_b(p["bs_n"])])[None, :],
        "bh_rz": jnp.concatenate([pad_b(p["bh_r"]), pad_b(p["bh_z"])])[None, :],
        "bh_n": pad_b(p["bh_n"])[None, :],
    }


def reference_forward(x, s, h, p):
    """Pure-JAX mirror of the PyTorch forward (unfused, unpadded params)."""
    def lin(v, src, gate):
        return v @ p[f"w{src}_{gate}"] + p[f"b{src}_{gate}"]

    hr = lin(h, "h", "r")
    hz = lin(h, "h", "z")
    r = 0.5 * (jax.nn.sigmoid(lin(x, "i", "r") + hr)
               + jax.nn.sigmoid(lin(s, "s", "r") + hr))
    z = 0.5 * (jax.nn.sigmoid(lin(x, "i", "z") + hz)
               + jax.nn.sigmoid(lin(s, "s", "z") + hz))
    n = jnp.tanh(lin(x, "i", "n") + lin(s, "s", "n") + lin(r * h, "h", "n"))
    return (1.0 - z) * n + z * h


if __name__ == "__main__":
    batch, input_size, hidden_size = 8, 32, 32

    key = jax.random.PRNGKey(0)
    k_p, k_x, k_s, k_h = jax.random.split(key, 4)

    raw = init_params(k_p, input_size, hidden_size)
    packed = pack_params(raw, input_size, hidden_size, dtype=jnp.float32)

    x = jax.random.normal(k_x, (batch, input_size), jnp.float32)
    seq_x = jax.random.normal(k_s, (batch, input_size), jnp.float32)
    hidden = jax.random.normal(k_h, (batch, hidden_size), jnp.float32)

    out = dual_input_gru_cell(x, seq_x, hidden, packed)
    out = jax.block_until_ready(out)

    ref = reference_forward(x, seq_x, hidden, raw)
    assert out.shape == (batch, hidden_size)
    assert jnp.allclose(out, ref, atol=1e-5, rtol=1e-5)

    print("KERNEL_OK")
</pallas_src>

<mosaic_0001>
module attributes {stable_mosaic.version = 11 : i64} {
  func.func @dual_gru_kernel(%arg0: i32, %arg1: memref<8x128xf32, #tpu.memory_space<vmem>>, %arg2: memref<8x128xf32, #tpu.memory_space<vmem>>, %arg3: memref<8x128xf32, #tpu.memory_space<vmem>>, %arg4: memref<128x384xf32, #tpu.memory_space<vmem>>, %arg5: memref<128x384xf32, #tpu.memory_space<vmem>>, %arg6: memref<128x256xf32, #tpu.memory_space<vmem>>, %arg7: memref<128x128xf32, #tpu.memory_space<vmem>>, %arg8: memref<1x384xf32, #tpu.memory_space<vmem>>, %arg9: memref<1x384xf32, #tpu.memory_space<vmem>>, %arg10: memref<1x256xf32, #tpu.memory_space<vmem>>, %arg11: memref<1x128xf32, #tpu.memory_space<vmem>>, %arg12: memref<8x128xf32, #tpu.memory_space<vmem>>) attributes {dimension_semantics = [#tpu.dimension_semantics<parallel>], iteration_bounds = array<i64: 1>, scalar_prefetch = 0 : i64, scratch_operands = 0 : i64, tpu.core_type = #tpu.core_type<tc>, window_params = [{transform_indices = @transform_0, window_bounds = array<i64: 8, 128>}, {transform_indices = @transform_1, window_bounds = array<i64: 8, 128>}, {transform_indices = @transform_2, window_bounds = array<i64: 8, 128>}, {pipeline_mode = #tpu.pipeline_mode<synchronous>, transform_indices = @transform_3, window_bounds = array<i64: 128, 384>}, {pipeline_mode = #tpu.pipeline_mode<synchronous>, transform_indices = @transform_4, window_bounds = array<i64: 128, 384>}, {pipeline_mode = #tpu.pipeline_mode<synchronous>, transform_indices = @transform_5, window_bounds = array<i64: 128, 256>}, {pipeline_mode = #tpu.pipeline_mode<synchronous>, transform_indices = @transform_6, window_bounds = array<i64: 128, 128>}, {pipeline_mode = #tpu.pipeline_mode<synchronous>, transform_indices = @transform_7, window_bounds = array<i64: 1, 384>}, {pipeline_mode = #tpu.pipeline_mode<synchronous>, transform_indices = @transform_8, window_bounds = array<i64: 1, 384>}, {pipeline_mode = #tpu.pipeline_mode<synchronous>, transform_indices = @transform_9, window_bounds = array<i64: 1, 256>}, {pipeline_mode = #tpu.pipeline_mode<synchronous>, transform_indices = @transform_10, window_bounds = array<i64: 1, 128>}, {transform_indices = @transform_11, window_bounds = array<i64: 8, 128>}]} {
    %c0 = arith.constant 0 : index
    %c0_0 = arith.constant 0 : index
    %0 = vector.load %arg1[%c0, %c0_0] : memref<8x128xf32, #tpu.memory_space<vmem>>, vector<8x128xf32>
    %c0_1 = arith.constant 0 : index
    %c0_2 = arith.constant 0 : index
    %1 = vector.load %arg2[%c0_1, %c0_2] : memref<8x128xf32, #tpu.memory_space<vmem>>, vector<8x128xf32>
    %c0_3 = arith.constant 0 : index
    %c0_4 = arith.constant 0 : index
    %2 = vector.load %arg3[%c0_3, %c0_4] : memref<8x128xf32, #tpu.memory_space<vmem>>, vector<8x128xf32>
    %c0_5 = arith.constant 0 : index
    %c0_6 = arith.constant 0 : index
    %3 = vector.load %arg4[%c0_5, %c0_6] : memref<128x384xf32, #tpu.memory_space<vmem>>, vector<128x384xf32>
    %cst = arith.constant dense<0.000000e+00> : vector<8x384xf32>
    %4 = tpu.matmul %0, %3, %cst {dimension_numbers = #tpu.dot_dimension_numbers<[1], [0], [0], [1], [0, 0, 1, 1], [], []>} : vector<8x128xf32>, vector<128x384xf32>, vector<8x384xf32> -> vector<8x384xf32>
    %c0_7 = arith.constant 0 : index
    %c0_8 = arith.constant 0 : index
    %5 = vector.load %arg8[%c0_7, %c0_8] : memref<1x384xf32, #tpu.memory_space<vmem>>, vector<1x384xf32>
    %6 = vector.broadcast %5 : vector<1x384xf32> to vector<8x384xf32>
    %7 = arith.addf %4, %6 : vector<8x384xf32>
    %c0_9 = arith.constant 0 : index
    %c0_10 = arith.constant 0 : index
    %8 = vector.load %arg5[%c0_9, %c0_10] : memref<128x384xf32, #tpu.memory_space<vmem>>, vector<128x384xf32>
    %cst_11 = arith.constant dense<0.000000e+00> : vector<8x384xf32>
    %9 = tpu.matmul %1, %8, %cst_11 {dimension_numbers = #tpu.dot_dimension_numbers<[1], [0], [0], [1], [0, 0, 1, 1], [], []>} : vector<8x128xf32>, vector<128x384xf32>, vector<8x384xf32> -> vector<8x384xf32>
    %c0_12 = arith.constant 0 : index
    %c0_13 = arith.constant 0 : index
    %10 = vector.load %arg9[%c0_12, %c0_13] : memref<1x384xf32, #tpu.memory_space<vmem>>, vector<1x384xf32>
    %11 = vector.broadcast %10 : vector<1x384xf32> to vector<8x384xf32>
    %12 = arith.addf %9, %11 : vector<8x384xf32>
    %c0_14 = arith.constant 0 : index
    %c0_15 = arith.constant 0 : index
    %13 = vector.load %arg6[%c0_14, %c0_15] : memref<128x256xf32, #tpu.memory_space<vmem>>, vector<128x256xf32>
    %cst_16 = arith.constant dense<0.000000e+00> : vector<8x256xf32>
    %14 = tpu.matmul %2, %13, %cst_16 {dimension_numbers = #tpu.dot_dimension_numbers<[1], [0], [0], [1], [0, 0, 1, 1], [], []>} : vector<8x128xf32>, vector<128x256xf32>, vector<8x256xf32> -> vector<8x256xf32>
    %c0_17 = arith.constant 0 : index
    %c0_18 = arith.constant 0 : index
    %15 = vector.load %arg10[%c0_17, %c0_18] : memref<1x256xf32, #tpu.memory_space<vmem>>, vector<1x256xf32>
    %16 = vector.broadcast %15 : vector<1x256xf32> to vector<8x256xf32>
    %17 = arith.addf %14, %16 : vector<8x256xf32>
    %18 = vector.extract_strided_slice %17 {offsets = [0, 0], sizes = [8, 128], strides = [1, 1]} : vector<8x256xf32> to vector<8x128xf32>
    %19 = vector.extract_strided_slice %17 {offsets = [0, 128], sizes = [8, 128], strides = [1, 1]} : vector<8x256xf32> to vector<8x128xf32>
    %20 = vector.extract_strided_slice %7 {offsets = [0, 0], sizes = [8, 128], strides = [1, 1]} : vector<8x384xf32> to vector<8x128xf32>
    %21 = arith.addf %20, %18 : vector<8x128xf32>
    %22 = arith.negf %21 : vector<8x128xf32>
    %23 = math.exp %22 : vector<8x128xf32>
    %cst_19 = arith.constant 1.000000e+00 : f32
    %24 = vector.broadcast %cst_19 : f32 to vector<8x128xf32>
    %25 = arith.addf %24, %23 : vector<8x128xf32>
    %26 = arith.divf %24, %25 : vector<8x128xf32>
    %27 = vector.extract_strided_slice %12 {offsets = [0, 0], sizes = [8, 128], strides = [1, 1]} : vector<8x384xf32> to vector<8x128xf32>
    %28 = arith.addf %27, %18 : vector<8x128xf32>
    %29 = arith.negf %28 : vector<8x128xf32>
    %30 = math.exp %29 : vector<8x128xf32>
    %cst_20 = arith.constant 1.000000e+00 : f32
    %31 = vector.broadcast %cst_20 : f32 to vector<8x128xf32>
    %32 = arith.addf %31, %30 : vector<8x128xf32>
    %33 = arith.divf %31, %32 : vector<8x128xf32>
    %34 = arith.addf %26, %33 : vector<8x128xf32>
    %cst_21 = arith.constant 5.000000e-01 : f32
    %35 = vector.broadcast %cst_21 : f32 to vector<8x128xf32>
    %36 = arith.mulf %35, %34 : vector<8x128xf32>
    %37 = vector.extract_strided_slice %7 {offsets = [0, 128], sizes = [8, 128], strides = [1, 1]} : vector<8x384xf32> to vector<8x128xf32>
    %38 = arith.addf %37, %19 : vector<8x128xf32>
    %39 = arith.negf %38 : vector<8x128xf32>
    %40 = math.exp %39 : vector<8x128xf32>
    %cst_22 = arith.constant 1.000000e+00 : f32
    %41 = vector.broadcast %cst_22 : f32 to vector<8x128xf32>
    %42 = arith.addf %41, %40 : vector<8x128xf32>
    %43 = arith.divf %41, %42 : vector<8x128xf32>
    %44 = vector.extract_strided_slice %12 {offsets = [0, 128], sizes = [8, 128], strides = [1, 1]} : vector<8x384xf32> to vector<8x128xf32>
    %45 = arith.addf %44, %19 : vector<8x128xf32>
    %46 = arith.negf %45 : vector<8x128xf32>
    %47 = math.exp %46 : vector<8x128xf32>
    %cst_23 = arith.constant 1.000000e+00 : f32
    %48 = vector.broadcast %cst_23 : f32 to vector<8x128xf32>
    %49 = arith.addf %48, %47 : vector<8x128xf32>
    %50 = arith.divf %48, %49 : vector<8x128xf32>
    %51 = arith.addf %43, %50 : vector<8x128xf32>
    %cst_24 = arith.constant 5.000000e-01 : f32
    %52 = vector.broadcast %cst_24 : f32 to vector<8x128xf32>
    %53 = arith.mulf %52, %51 : vector<8x128xf32>
    %54 = arith.mulf %36, %2 : vector<8x128xf32>
    %c0_25 = arith.constant 0 : index
    %c0_26 = arith.constant 0 : index
    %55 = vector.load %arg7[%c0_25, %c0_26] : memref<128x128xf32, #tpu.memory_space<vmem>>, vector<128x128xf32>
    %cst_27 = arith.constant dense<0.000000e+00> : vector<8x128xf32>
    %56 = tpu.matmul %54, %55, %cst_27 {dimension_numbers = #tpu.dot_dimension_numbers<[1], [0], [0], [1], [0, 0, 1, 1], [], []>} : vector<8x128xf32>, vector<128x128xf32>, vector<8x128xf32> -> vector<8x128xf32>
    %c0_28 = arith.constant 0 : index
    %c0_29 = arith.constant 0 : index
    %57 = vector.load %arg11[%c0_28, %c0_29] : memref<1x128xf32, #tpu.memory_space<vmem>>, vector<1x128xf32>
    %58 = vector.broadcast %57 : vector<1x128xf32> to vector<8x128xf32>
    %59 = arith.addf %56, %58 : vector<8x128xf32>
    %60 = vector.extract_strided_slice %7 {offsets = [0, 256], sizes = [8, 128], strides = [1, 1]} : vector<8x384xf32> to vector<8x128xf32>
    %61 = vector.extract_strided_slice %12 {offsets = [0, 256], sizes = [8, 128], strides = [1, 1]} : vector<8x384xf32> to vector<8x128xf32>
    %62 = arith.addf %60, %61 : vector<8x128xf32>
    %63 = arith.addf %62, %59 : vector<8x128xf32>
    %64 = math.tanh %63 : vector<8x128xf32>
    %cst_30 = arith.constant 1.000000e+00 : f32
    %65 = vector.broadcast %cst_30 : f32 to vector<8x128xf32>
    %66 = arith.subf %65, %53 : vector<8x128xf32>
    %67 = arith.mulf %66, %64 : vector<8x128xf32>
    %68 = arith.mulf %53, %2 : vector<8x128xf32>
    %69 = arith.addf %67, %68 : vector<8x128xf32>
    %c0_31 = arith.constant 0 : index
    %c0_32 = arith.constant 0 : index
    %70 = vector.load %arg12[%c0_31, %c0_32] : memref<8x128xf32, #tpu.memory_space<vmem>>, vector<8x128xf32>
    tpu.vector_store %arg12[%c0_31, %c0_32], %69 {strides = array<i32>} : memref<8x128xf32, #tpu.memory_space<vmem>>, vector<8x128xf32>,
    return
  }
  func.func @transform_0(%arg0: i32) -> (i32, i32) {
    %c0_i32 = arith.constant 0 : i32
    %c0_i32_0 = arith.constant 0 : i32
    return %arg0, %c0_i32 : i32, i32
  }
  func.func @transform_1(%arg0: i32) -> (i32, i32) {
    %c0_i32 = arith.constant 0 : i32
    %c0_i32_0 = arith.constant 0 : i32
    return %arg0, %c0_i32 : i32, i32
  }
  func.func @transform_2(%arg0: i32) -> (i32, i32) {
    %c0_i32 = arith.constant 0 : i32
    %c0_i32_0 = arith.constant 0 : i32
    return %arg0, %c0_i32 : i32, i32
  }
  func.func @transform_3(%arg0: i32) -> (i32, i32) {
    %c0_i32 = arith.constant 0 : i32
    %c0_i32_0 = arith.constant 0 : i32
    %c0_i32_1 = arith.constant 0 : i32
    return %c0_i32, %c0_i32_0 : i32, i32
  }
  func.func @transform_4(%arg0: i32) -> (i32, i32) {
    %c0_i32 = arith.constant 0 : i32
    %c0_i32_0 = arith.constant 0 : i32
    %c0_i32_1 = arith.constant 0 : i32
    return %c0_i32, %c0_i32_0 : i32, i32
  }
  func.func @transform_5(%arg0: i32) -> (i32, i32) {
    %c0_i32 = arith.constant 0 : i32
    %c0_i32_0 = arith.constant 0 : i32
    %c0_i32_1 = arith.constant 0 : i32
    return %c0_i32, %c0_i32_0 : i32, i32
  }
  func.func @transform_6(%arg0: i32) -> (i32, i32) {
    %c0_i32 = arith.constant 0 : i32
    %c0_i32_0 = arith.constant 0 : i32
    %c0_i32_1 = arith.constant 0 : i32
    return %c0_i32, %c0_i32_0 : i32, i32
  }
  func.func @transform_7(%arg0: i32) -> (i32, i32) {
    %c0_i32 = arith.constant 0 : i32
    %c0_i32_0 = arith.constant 0 : i32
    %c0_i32_1 = arith.constant 0 : i32
    return %c0_i32, %c0_i32_0 : i32, i32
  }
  func.func @transform_8(%arg0: i32) -> (i32, i32) {
    %c0_i32 = arith.constant 0 : i32
    %c0_i32_0 = arith.constant 0 : i32
    %c0_i32_1 = arith.constant 0 : i32
    return %c0_i32, %c0_i32_0 : i32, i32
  }
  func.func @transform_9(%arg0: i32) -> (i32, i32) {
    %c0_i32 = arith.constant 0 : i32
    %c0_i32_0 = arith.constant 0 : i32
    %c0_i32_1 = arith.constant 0 : i32
    return %c0_i32, %c0_i32_0 : i32, i32
  }
  func.func @transform_10(%arg0: i32) -> (i32, i32) {
    %c0_i32 = arith.constant 0 : i32
    %c0_i32_0 = arith.constant 0 : i32
    %c0_i32_1 = arith.constant 0 : i32
    return %c0_i32, %c0_i32_0 : i32, i32
  }
  func.func @transform_11(%arg0: i32) -> (i32, i32) {
    %c0_i32 = arith.constant 0 : i32
    %c0_i32_0 = arith.constant 0 : i32
    return %arg0, %c0_i32 : i32, i32
  }
}

</mosaic_0001>

<bundles_post_ra>
// kernel: dual_input_gru_cell.1
= control target key start
LH: loop header
LB: loop body
LE: loop exit
PB: predicated region body
PF: predicated region fallthrough
CT: control target
= control target key end

     0   :  { %16 = vsyncpa [#allocation3], 0  ;;  %s1254_s0 = inlined_call_operand.vmem [shape: f32[8,128], index: 0, kind: input, shape index: {}]   ;;  %s1255_s1 = inlined_call_operand.vmem [shape: f32[8,128], index: 1, kind: input, shape index: {}]   ;;  %s1256_s2 = inlined_call_operand.vmem [shape: f32[8,128], index: 2, kind: input, shape index: {}]   ;;  %s1257_s3 = inlined_call_operand.hbm [shape: f32[128,384], index: 3, kind: input, shape index: {}]   ;;  %s1258_s4 = inlined_call_operand.hbm [shape: f32[128,384], index: 4, kind: input, shape index: {}]   ;;  %s1259_s5 = inlined_call_operand.hbm [shape: f32[128,256], index: 5, kind: input, shape index: {}]   ;;  %s1260_s6 = inlined_call_operand.hbm [shape: f32[128,128], index: 6, kind: input, shape index: {}]   ;;  %s1261_s7 = inlined_call_operand.vmem [shape: f32[1,384], index: 7, kind: input, shape index: {}]   ;;  %s1262_s8 = inlined_call_operand.vmem [shape: f32[1,384], index: 8, kind: input, shape index: {}]   ;;  %s1263_s9 = inlined_call_operand.vmem [shape: f32[1,256], index: 9, kind: input, shape index: {}]   ;;  %s1264_s10 = inlined_call_operand.vmem [shape: f32[1,128], index: 10, kind: input, shape index: {}]   ;;  %s1265_s11 = inlined_call_operand.hbm [shape: f32[8,128], index: 11, kind: output, shape index: {}]  }
   0x1   :  { %17 = vsyncpa [#allocation6], 0 }
   0x2   :  { %18 = vsyncpa [#allocation9], 0 }
   0x3   :  { %19 = vsyncpa [#allocation4], 0  ;;  %s1075_s17 = smov [#allocation5]   ;;  %s1076_s19 = smov [#allocation2]  }
   0x4   :  { %s43_s18 = sshll.u32 %s1075_s17, 4  ;;  %s31_s20 = sshll.u32 %s1076_s19, 4  ;;  %s44_s18 = int_to_ptr.vmem [resolvable:$true] %s43_s18  ;;  %s32_s20 = int_to_ptr.vmem [resolvable:$true] %s31_s20 }
   0x5   :  { %s975_s21 = scalar_lea.vmem %s44_s18, 6144  ;;  %p980_p1 = scmp.lt.s32.totalorder %s44_s18, %s44_s18 }
   0x6   :  { %p976_p0 = scmp.ne.s32.totalorder %s44_s18, %s975_s21  ;;  %p981_p2 = scmp.lt.s32.totalorder %s975_s21, %s975_s21 }
   0x8   :  { %p982_p3 = por %p981_p2, %p980_p1 }
   0xa   :  { %p983_p4 = pnand %p982_p3, %p976_p0 }
   0xc   :  { %986 = shalt.err (!%p983_p4)
}
   0xd   :  { %s1077_s22 = smov 384   ;;  %s1078_s23 = smov 24  }
   0xe   :  { %49 = dma.hbm_to_vmem [thread:$0]  %s1258_s4, 6144, %s44_s18, [#allocation6], %s1077_s22, %s1077_s22, %s1078_s23  }
   0xf   :  { %s995_s26 = scalar_lea.vmem %s32_s20, 6144  ;;  %p1000_p6 = scmp.lt.s32.totalorder %s32_s20, %s32_s20 }
  0x10   :  { %p996_p5 = scmp.ne.s32.totalorder %s32_s20, %s995_s26  ;;  %p1001_p7 = scmp.lt.s32.totalorder %s995_s26, %s995_s26 }
  0x12   :  { %p1002_p8 = por %p1001_p7, %p1000_p6 }
  0x14   :  { %p1003_p9 = pnand %p1002_p8, %p996_p5 }
  0x16   :  { %1006 = shalt.err (!%p1003_p9)
}
  0x17   :  { %37 = dma.hbm_to_vmem [thread:$0]  %s1257_s3, 6144, %s32_s20, [#allocation3], %s1077_s22, %s1077_s22, %s1078_s23  }
  0x18   :  { %s1079_s29 = smov [#allocation7]  }
  0x19   :  { %s55_s30 = sshll.u32 %s1079_s29, 4  ;;  %s56_s30 = int_to_ptr.vmem [resolvable:$true] %s55_s30 }
  0x1a   :  { %s1015_s12 = scalar_lea.vmem %s56_s30, 4096  ;;  %p1020_p11 = scmp.lt.s32.totalorder %s56_s30, %s56_s30 }
  0x1b   :  { %p1016_p10 = scmp.ne.s32.totalorder %s56_s30, %s1015_s12  ;;  %p1021_p12 = scmp.lt.s32.totalorder %s1015_s12, %s1015_s12 }
  0x1d   :  { %p1022_p13 = por %p1021_p12, %p1020_p11 }
  0x1f   :  { %p1023_p0 = pnand %p1022_p13, %p1016_p10 }
  0x21   :  { %1026 = shalt.err (!%p1023_p0)
}
  0x22   :  { %s1080_s4 = smov 256   ;;  %s1081_s13 = smov 16  }
  0x23   :  { %61 = dma.hbm_to_vmem [thread:$0]  %s1259_s5, 4096, %s56_s30, [#allocation6], %s1080_s4, %s1080_s4, %s1081_s13  }
  0x24   :  { %s1082_s16 = smov [#allocation8]  }
  0x25   :  { %s67_s17 = sshll.u32 %s1082_s16, 4  ;;  %s68_s17 = int_to_ptr.vmem [resolvable:$true] %s67_s17 }
  0x26   :  { %s1035_s3 = scalar_lea.vmem %s68_s17, 2048  ;;  %p1040_p2 = scmp.lt.s32.totalorder %s68_s17, %s68_s17 }
  0x27   :  { %p1036_p1 = scmp.ne.s32.totalorder %s68_s17, %s1035_s3  ;;  %p1041_p3 = scmp.lt.s32.totalorder %s1035_s3, %s1035_s3 }
  0x29   :  { %p1042_p4 = por %p1041_p3, %p1040_p2 }
  0x2b   :  { %p1043_p5 = pnand %p1042_p4, %p1036_p1 }
  0x2d   :  { %1046 = shalt.err (!%p1043_p5)
}
  0x2e   :  { %s1083_s18 = smov 128   ;;  %s1084_s19 = smov 8  }
  0x2f   :  { %73 = dma.hbm_to_vmem [thread:$0]  %s1260_s6, 2048, %s68_s17, [#allocation9], %s1083_s18, %s1083_s18, %s1084_s19  }
  0x30   :  { %1067 = dma.done.wait [#allocation3], 6144  }
  0x31   :  { %1068 = vsyncadd [#allocation3], 4294961152 }
  0x32   :  { %1069 = dma.done.wait [#allocation6], 10240  }
  0x33   :  { %1070 = vsyncadd [#allocation6], 4294957056 }
  0x34   :  { %1071 = dma.done.wait [#allocation9], 2048  }
  0x35   :  { %1072 = vsyncadd [#allocation9], 4294965248  ;;  %v1085_v0 = vmov 0.0   ;;  %v143_v1 = vld [vmem:[#allocation2 + $0x170] sm:$0xff]  ;;  %v142_v2 = vld [vmem:[#allocation2 + $0x168] sm:$0xff]  ;;  %vm1086_vm0 = vmmov 0  }
  0x36   :  { %226 = vmatprep.mubr.f32.mxu0 %v1085_v0  ;;  %831 = vmatprep.subr.mxu1 %v1085_v0  ;;  %v140_v3 = vld [vmem:[#allocation2 + $0x158] sm:$0xff]  ;;  %v139_v4 = vld [vmem:[#allocation2 + $0x150] sm:$0xff]  ;;  %v137_v5 = vld [vmem:[#allocation2 + $0x140] sm:$0xff] }
  0x37   :  { %162 = vmatprep.subr.mxu0 %v143_v1  ;;  %v136_v6 = vld [vmem:[#allocation2 + $0x138] sm:$0xff]  ;;  %v134_v7 = vld [vmem:[#allocation2 + $0x128] sm:$0xff]  ;;  %v133_v8 = vld [vmem:[#allocation2 + $0x120] sm:$0xff]  ;;  %863 = vmatprep.mubr.msk.f32.mxu1 %vm1086_vm0, %v1085_v0 }
  0x38   :  { %163 = vmatpush1.msra.mxu0 %v142_v2  ;;  %v131_v9 = vld [vmem:[#allocation2 + $0x110] sm:$0xff]  ;;  %v130_v10 = vld [vmem:[#allocation2 + $0x108] sm:$0xff]  ;;  %v128_v11 = vld [vmem:[#allocation2 + $0xf8] sm:$0xff] }
  0x39   :  { %164 = vmatprep.subr.mxu0 %v140_v3  ;;  %v127_v12 = vld [vmem:[#allocation2 + $0xf0] sm:$0xff]  ;;  %v125_v13 = vld [vmem:[#allocation2 + $0xe0] sm:$0xff]  ;;  %v124_v14 = vld [vmem:[#allocation2 + $0xd8] sm:$0xff] }
  0x3a   :  { %165 = vmatpush1.msra.mxu0 %v139_v4  ;;  %v122_v15 = vld [vmem:[#allocation2 + $0xc8] sm:$0xff]  ;;  %v121_v16 = vld [vmem:[#allocation2 + $0xc0] sm:$0xff]  ;;  %v119_v17 = vld [vmem:[#allocation2 + $0xb0] sm:$0xff] }
  0x3b   :  { %166 = vmatprep.subr.mxu0 %v137_v5  ;;  %v118_v18 = vld [vmem:[#allocation2 + $0xa8] sm:$0xff]  ;;  %v116_v19 = vld [vmem:[#allocation2 + $0x98] sm:$0xff]  ;;  %v115_v20 = vld [vmem:[#allocation2 + $0x90] sm:$0xff] }
  0x3c   :  { %167 = vmatpush1.msra.mxu0 %v136_v6  ;;  %v113_v21 = vld [vmem:[#allocation2 + $0x80] sm:$0xff]  ;;  %v112_v22 = vld [vmem:[#allocation2 + $0x78] sm:$0xff]  ;;  %v110_v23 = vld [vmem:[#allocation2 + $0x68] sm:$0xff] }
  0x3d   :  { %168 = vmatprep.subr.mxu0 %v134_v7  ;;  %v109_v24 = vld [vmem:[#allocation2 + $0x60] sm:$0xff]  ;;  %v107_v25 = vld [vmem:[#allocation2 + $0x50] sm:$0xff]  ;;  %v106_v26 = vld [vmem:[#allocation2 + $0x48] sm:$0xff] }
  0x3e   :  { %169 = vmatpush1.msra.mxu0 %v133_v8  ;;  %v104_v27 = vld [vmem:[#allocation2 + $0x38] sm:$0xff]  ;;  %v103_v28 = vld [vmem:[#allocation2 + $0x30] sm:$0xff]  ;;  %v101_v29 = vld [vmem:[#allocation2 + $0x20] sm:$0xff] }
  0x3f   :  { %170 = vmatprep.subr.mxu0 %v131_v9  ;;  %v100_v30 = vld [vmem:[#allocation2 + $0x18] sm:$0xff]  ;;  %v98_v31 = vld [vmem:[#allocation2 + $0x8] sm:$0xff]  ;;  %v97_v32 = vld [vmem:[#allocation2] sm:$0xff] }
  0x40   :  { %171 = vmatpush1.msra.mxu0 %v130_v10  ;;  %v1165_v33 = vld [vmem:[%s1254_s0] sm:$0xff]  ;;  %v349_v34 = vld [vmem:[#allocation5 + $0x170] sm:$0xff]  ;;  %v348_v35 = vld [vmem:[#allocation5 + $0x168] sm:$0xff] }
  0x41   :  { %172 = vmatprep.subr.mxu0 %v128_v11  ;;  %v346_v36 = vld [vmem:[#allocation5 + $0x158] sm:$0xff]  ;;  %v345_v37 = vld [vmem:[#allocation5 + $0x150] sm:$0xff]  ;;  %v343_v39 = vld [vmem:[#allocation5 + $0x140] sm:$0xff] }
  0x42   :  { %173 = vmatpush1.msra.mxu0 %v127_v12  ;;  %v144_v38 = vld [vmem:[#allocation2 + $0x178] sm:$0xff]  ;;  %v141_v40 = vld [vmem:[#allocation2 + $0x160] sm:$0xff]  ;;  %v340_v42 = vld [vmem:[#allocation5 + $0x128] sm:$0xff] }
  0x43   :  { %174 = vmatprep.subr.mxu0 %v125_v13  ;;  %v342_v41 = vld [vmem:[#allocation5 + $0x138] sm:$0xff]  ;;  %832 = vmatpush3.msra.mxu1 %v144_v38  ;;  %v138_v43 = vld [vmem:[#allocation2 + $0x148] sm:$0xff]  ;;  %v339_v44 = vld [vmem:[#allocation5 + $0x120] sm:$0xff] }
  0x44   :  { %175 = vmatpush1.msra.mxu0 %v124_v14  ;;  %833 = vmatprep.subr.mxu1 %v1085_v0  ;;  %v337_v45 = vld [vmem:[#allocation5 + $0x110] sm:$0xff]  ;;  %v336_v47 = vld [vmem:[#allocation5 + $0x108] sm:$0xff]  ;;  %v334_v48 = vld [vmem:[#allocation5 + $0xf8] sm:$0xff] }
  0x45   :  { %176 = vmatprep.subr.mxu0 %v122_v15  ;;  %834 = vmatpush3.msra.mxu1 %v141_v40  ;;  %v135_v46 = vld [vmem:[#allocation2 + $0x130] sm:$0xff]  ;;  %v132_v49 = vld [vmem:[#allocation2 + $0x118] sm:$0xff]  ;;  %v331_v51 = vld [vmem:[#allocation5 + $0xe0] sm:$0xff] }
  0x46   :  { %177 = vmatpush1.msra.mxu0 %v121_v16  ;;  %835 = vmatprep.subr.mxu1 %v1085_v0  ;;  %v333_v50 = vld [vmem:[#allocation5 + $0xf0] sm:$0xff]  ;;  %v129_v52 = vld [vmem:[#allocation2 + $0x100] sm:$0xff]  ;;  %v330_v53 = vld [vmem:[#allocation5 + $0xd8] sm:$0xff] }
  0x47   :  { %178 = vmatprep.subr.mxu0 %v119_v17  ;;  %836 = vmatpush3.msra.mxu1 %v138_v43  ;;  %v328_v54 = vld [vmem:[#allocation5 + $0xc8] sm:$0xff]  ;;  %v327_v56 = vld [vmem:[#allocation5 + $0xc0] sm:$0xff]  ;;  %v325_v57 = vld [vmem:[#allocation5 + $0xb0] sm:$0xff] }
  0x48   :  { %179 = vmatpush1.msra.mxu0 %v118_v18  ;;  %837 = vmatprep.subr.mxu1 %v1085_v0  ;;  %v126_v55 = vld [vmem:[#allocation2 + $0xe8] sm:$0xff]  ;;  %v123_v58 = vld [vmem:[#allocation2 + $0xd0] sm:$0xff]  ;;  %v322_v60 = vld [vmem:[#allocation5 + $0x98] sm:$0xff] }
  0x49   :  { %180 = vmatprep.subr.mxu0 %v116_v19  ;;  %838 = vmatpush3.msra.mxu1 %v135_v46  ;;  %v324_v59 = vld [vmem:[#allocation5 + $0xa8] sm:$0xff]  ;;  %v120_v61 = vld [vmem:[#allocation2 + $0xb8] sm:$0xff]  ;;  %v321_v62 = vld [vmem:[#allocation5 + $0x90] sm:$0xff] }
  0x4a   :  { %181 = vmatpush1.msra.mxu0 %v115_v20  ;;  %839 = vmatprep.subr.mxu1 %v1085_v0  ;;  %v319_v63 = vld [vmem:[#allocation5 + $0x80] sm:$0xff]  ;;  %v318_v2 = vld [vmem:[#allocation5 + $0x78] sm:$0xff]  ;;  %v316_v3 = vld [vmem:[#allocation5 + $0x68] sm:$0xff] }
  0x4b   :  { %182 = vmatprep.subr.mxu0 %v113_v21  ;;  %840 = vmatpush3.msra.mxu1 %v132_v49  ;;  %v117_v1 = vld [vmem:[#allocation2 + $0xa0] sm:$0xff]  ;;  %v313_v5 = vld [vmem:[#allocation5 + $0x50] sm:$0xff]  ;;  %v312_v6 = vld [vmem:[#allocation5 + $0x48] sm:$0xff] }
  0x4c   :  { %183 = vmatpush1.msra.mxu0 %v112_v22  ;;  %841 = vmatprep.subr.mxu1 %v1085_v0  ;;  %v315_v4 = vld [vmem:[#allocation5 + $0x60] sm:$0xff]  ;;  %v310_v7 = vld [vmem:[#allocation5 + $0x38] sm:$0xff]  ;;  %v309_v8 = vld [vmem:[#allocation5 + $0x30] sm:$0xff] }
  0x4d   :  { %184 = vmatprep.subr.mxu0 %v110_v23  ;;  %842 = vmatpush3.msra.mxu1 %v129_v52  ;;  %v307_v9 = vld [vmem:[#allocation5 + $0x20] sm:$0xff]  ;;  %v306_v10 = vld [vmem:[#allocation5 + $0x18] sm:$0xff]  ;;  %v304_v11 = vld [vmem:[#allocation5 + $0x8] sm:$0xff] }
  0x4e   :  { %185 = vmatpush1.msra.mxu0 %v109_v24  ;;  %843 = vmatprep.subr.mxu1 %v1085_v0  ;;  %v303_v12 = vld [vmem:[#allocation5] sm:$0xff]  ;;  %v540_v14 = vld [vmem:[#allocation7 + $0xf8] sm:$0xff]  ;;  %v539_v15 = vld [vmem:[#allocation7 + $0xf0] sm:$0xff] }
  0x4f   :  { %186 = vmatprep.subr.mxu0 %v107_v25  ;;  %844 = vmatpush3.msra.mxu1 %v126_v55  ;;  %v1182_v13 = vld [vmem:[%s1255_s1] sm:$0xff]  ;;  %v538_v16 = vld [vmem:[#allocation7 + $0xe8] sm:$0xff]  ;;  %v536_v18 = vld [vmem:[#allocation7 + $0xd8] sm:$0xff] }
  0x50   :  { %187 = vmatpush1.msra.mxu0 %v106_v26  ;;  %845 = vmatprep.subr.mxu1 %v1085_v0  ;;  %v537_v17 = vld [vmem:[#allocation7 + $0xe0] sm:$0xff]  ;;  %v535_v19 = vld [vmem:[#allocation7 + $0xd0] sm:$0xff]  ;;  %v534_v20 = vld [vmem:[#allocation7 + $0xc8] sm:$0xff] }
  0x51   :  { %188 = vmatprep.subr.mxu0 %v104_v27  ;;  %846 = vmatpush3.msra.mxu1 %v123_v58  ;;  %v533_v21 = vld [vmem:[#allocation7 + $0xc0] sm:$0xff]  ;;  %v532_v22 = vld [vmem:[#allocation7 + $0xb8] sm:$0xff]  ;;  %v531_v23 = vld [vmem:[#allocation7 + $0xb0] sm:$0xff] }
  0x52   :  { %189 = vmatpush1.msra.mxu0 %v103_v28  ;;  %847 = vmatprep.subr.mxu1 %v1085_v0  ;;  %v530_v24 = vld [vmem:[#allocation7 + $0xa8] sm:$0xff]  ;;  %v529_v25 = vld [vmem:[#allocation7 + $0xa0] sm:$0xff]  ;;  %v528_v26 = vld [vmem:[#allocation7 + $0x98] sm:$0xff] }
  0x53   :  { %190 = vmatprep.subr.mxu0 %v101_v29  ;;  %848 = vmatpush3.msra.mxu1 %v120_v61  ;;  %v527_v27 = vld [vmem:[#allocation7 + $0x90] sm:$0xff]  ;;  %v526_v28 = vld [vmem:[#allocation7 + $0x88] sm:$0xff]  ;;  %v525_v29 = vld [vmem:[#allocation7 + $0x80] sm:$0xff] }
  0x54   :  { %191 = vmatpush1.msra.mxu0 %v100_v30  ;;  %849 = vmatprep.subr.mxu1 %v1085_v0  ;;  %v524_v30 = vld [vmem:[#allocation7 + $0x78] sm:$0xff]  ;;  %v517_v38 = vld [vmem:[#allocation7 + $0x40] sm:$0xff]  ;;  %v515_v40 = vld [vmem:[#allocation7 + $0x30] sm:$0xff] }
  0x55   :  { %192 = vmatprep.subr.mxu0 %v98_v31  ;;  %850 = vmatpush3.msra.mxu1 %v117_v1  ;;  %v523_v31 = vld [vmem:[#allocation7 + $0x70] sm:$0xff]  ;;  %v512_v43 = vld [vmem:[#allocation7 + $0x18] sm:$0xff]  ;;  %v509_v46 = vld [vmem:[#allocation7] sm:$0xff] }
  0x56   :  { %193 = vmatpush1.msra.mxu0 %v97_v32  ;;  %851 = vmatprep.subr.mxu1 %v1085_v0  ;;  %v522_v32 = vld [vmem:[#allocation7 + $0x68] sm:$0xff]  ;;  %v111_v49 = vld [vmem:[#allocation2 + $0x70] sm:$0xff]  ;;  %v347_v55 = vld [vmem:[#allocation5 + $0x160] sm:$0xff] }
  0x57   :  { %227 = vmatmul.mubr.f32.vlgmr.msra.gmra.mxu0 %v1165_v33  ;;  %368 = vmatprep.subr.mxu0 %v349_v34  ;;  %v521_v34 = vld [vmem:[#allocation7 + $0x60] sm:$0xff]  ;;  %v102_v52 = vld [vmem:[#allocation2 + $0x28] sm:$0xff]  ;;  %v338_v58 = vld [vmem:[#allocation5 + $0x118] sm:$0xff] }
  0x58   :  { %369 = vmatpush1.msra.mxu0 %v348_v35  ;;  %432 = vmatprep.mubr.f32.mxu0 %v1085_v0  ;;  %v520_v35 = vld [vmem:[#allocation7 + $0x58] sm:$0xff]  ;;  %v317_v1 = vld [vmem:[#allocation5 + $0x70] sm:$0xff] }
  0x59   :  { %370 = vmatprep.subr.mxu0 %v346_v36  ;;  %v519_v36 = vld [vmem:[#allocation7 + $0x50] sm:$0xff]  ;;  %v326_v61 = vld [vmem:[#allocation5 + $0xb8] sm:$0xff] }
  0x5a   :  { %371 = vmatpush1.msra.mxu0 %v345_v37  ;;  %v518_v37 = vld [vmem:[#allocation7 + $0x48] sm:$0xff] }
  0x5b   :  { %372 = vmatprep.subr.mxu0 %v343_v39  ;;  %v516_v39 = vld [vmem:[#allocation7 + $0x38] sm:$0xff] }
  0x5c   :  { %373 = vmatpush1.msra.mxu0 %v342_v41  ;;  %v514_v41 = vld [vmem:[#allocation7 + $0x28] sm:$0xff] }
  0x5d   :  { %374 = vmatprep.subr.mxu0 %v340_v42  ;;  %v513_v42 = vld [vmem:[#allocation7 + $0x20] sm:$0xff] }
  0x5e   :  { %375 = vmatpush1.msra.mxu0 %v339_v44  ;;  %v511_v44 = vld [vmem:[#allocation7 + $0x10] sm:$0xff] }
  0x5f   :  { %376 = vmatprep.subr.mxu0 %v337_v45  ;;  %v510_v45 = vld [vmem:[#allocation7 + $0x8] sm:$0xff] }
  0x60   :  { %377 = vmatpush1.msra.mxu0 %v336_v47  ;;  %v1189_v47 = vld [vmem:[%s1256_s2] sm:$0xff] }
  0x61   :  { %378 = vmatprep.subr.mxu0 %v334_v48  ;;  %v114_v48 = vld [vmem:[#allocation2 + $0x88] sm:$0xff] }
  0x62   :  { %379 = vmatpush1.msra.mxu0 %v333_v50  ;;  %852 = vmatpush3.msra.mxu1 %v114_v48  ;;  %v108_v50 = vld [vmem:[#allocation2 + $0x58] sm:$0xff] }
  0x63   :  { %380 = vmatprep.subr.mxu0 %v331_v51  ;;  %853 = vmatprep.subr.mxu1 %v1085_v0  ;;  %v105_v51 = vld [vmem:[#allocation2 + $0x40] sm:$0xff] }
  0x64   :  { %381 = vmatpush1.msra.mxu0 %v330_v53  ;;  %854 = vmatpush3.msra.mxu1 %v111_v49  ;;  %v99_v53 = vld [vmem:[#allocation2 + $0x10] sm:$0xff] }
  0x65   :  { %382 = vmatprep.subr.mxu0 %v328_v54  ;;  %855 = vmatprep.subr.mxu1 %v1085_v0  ;;  %v350_v54 = vld [vmem:[#allocation5 + $0x178] sm:$0xff] }
  0x66   :  { %383 = vmatpush1.msra.mxu0 %v327_v56  ;;  %856 = vmatpush3.msra.mxu1 %v108_v50  ;;  %v344_v56 = vld [vmem:[#allocation5 + $0x148] sm:$0xff] }
  0x67   :  { %384 = vmatprep.subr.mxu0 %v325_v57  ;;  %857 = vmatprep.subr.mxu1 %v1085_v0  ;;  %v341_v57 = vld [vmem:[#allocation5 + $0x130] sm:$0xff] }
  0x68   :  { %385 = vmatpush1.msra.mxu0 %v324_v59  ;;  %858 = vmatpush3.msra.mxu1 %v105_v51  ;;  %v332_v59 = vld [vmem:[#allocation5 + $0xe8] sm:$0xff] }
  0x69   :  { %386 = vmatprep.subr.mxu0 %v322_v60  ;;  %859 = vmatprep.subr.mxu1 %v1085_v0  ;;  %v329_v60 = vld [vmem:[#allocation5 + $0xd0] sm:$0xff] }
  0x6a   :  { %387 = vmatpush1.msra.mxu0 %v321_v62  ;;  %860 = vmatpush3.msra.mxu1 %v102_v52  ;;  %v323_v62 = vld [vmem:[#allocation5 + $0xa0] sm:$0xff] }
  0x6b   :  { %388 = vmatprep.subr.mxu0 %v319_v63  ;;  %861 = vmatprep.subr.mxu1 %v1085_v0  ;;  %v320_v63 = vld [vmem:[#allocation5 + $0x88] sm:$0xff] }
  0x6c   :  { %389 = vmatpush1.msra.mxu0 %v318_v2  ;;  %862 = vmatpush3.msra.mxu1 %v99_v53  ;;  %v314_v2 = vld [vmem:[#allocation5 + $0x58] sm:$0xff] }
  0x6d   :  { %390 = vmatprep.subr.mxu0 %v316_v3  ;;  %866 = vmatprep.subr.mxu1 %v1085_v0  ;;  %v311_v3 = vld [vmem:[#allocation5 + $0x40] sm:$0xff] }
  0x6e   :  { %391 = vmatpush1.msra.mxu0 %v315_v4  ;;  %864 = vmatmul.mubr.f32.vlgmr.msra.gmra.mxu1 %v1165_v33  ;;  %v335_v33 = vld [vmem:[#allocation5 + $0x100] sm:$0xff]  ;;  %v308_v4 = vld [vmem:[#allocation5 + $0x28] sm:$0xff] }
  0x6f   :  { %392 = vmatprep.subr.mxu0 %v313_v5  ;;  %867 = vmatpush3.msra.mxu1 %v350_v54  ;;  %v305_v5 = vld [vmem:[#allocation5 + $0x10] sm:$0xff] }
  0x70   :  { %393 = vmatpush1.msra.mxu0 %v312_v6  ;;  %898 = vmatprep.mubr.msk.f32.mxu1 %vm1086_vm0, %v1085_v0  ;;  %v672_v6 = vld [vmem:[#allocation8 + $0x78] sm:$0xff] }
  0x71   :  { %394 = vmatprep.subr.mxu0 %v310_v7  ;;  %868 = vmatprep.subr.mxu1 %v1085_v0  ;;  %v671_v7 = vld [vmem:[#allocation8 + $0x70] sm:$0xff] }
  0x72   :  { %395 = vmatpush1.msra.mxu0 %v309_v8  ;;  %869 = vmatpush3.msra.mxu1 %v347_v55  ;;  %v670_v8 = vld [vmem:[#allocation8 + $0x68] sm:$0xff] }
  0x73   :  { %396 = vmatprep.subr.mxu0 %v307_v9  ;;  %870 = vmatprep.subr.mxu1 %v1085_v0  ;;  %v669_v9 = vld [vmem:[#allocation8 + $0x60] sm:$0xff] }
  0x74   :  { %397 = vmatpush1.msra.mxu0 %v306_v10  ;;  %871 = vmatpush3.msra.mxu1 %v344_v56  ;;  %v668_v10 = vld [vmem:[#allocation8 + $0x58] sm:$0xff] }
  0x75   :  { %398 = vmatprep.subr.mxu0 %v304_v11  ;;  %872 = vmatprep.subr.mxu1 %v1085_v0  ;;  %v667_v11 = vld [vmem:[#allocation8 + $0x50] sm:$0xff] }
  0x76   :  { %399 = vmatpush1.msra.mxu0 %v303_v12  ;;  %873 = vmatpush3.msra.mxu1 %v341_v57  ;;  %v666_v12 = vld [vmem:[#allocation8 + $0x48] sm:$0xff] }
  0x77   :  { %433 = vmatmul.mubr.f32.vlgmr.msra.gmra.mxu0 %v1182_v13  ;;  %553 = vmatprep.subr.mxu0 %v540_v14  ;;  %v664_v14 = vld [vmem:[#allocation8 + $0x38] sm:$0xff] }
  0x78   :  { %554 = vmatpush1.msra.mxu0 %v539_v15  ;;  %617 = vmatprep.mubr.f32.mxu0 %v1085_v0  ;;  %v663_v15 = vld [vmem:[#allocation8 + $0x30] sm:$0xff] }
  0x79   :  { %555 = vmatprep.subr.mxu0 %v538_v16  ;;  %874 = vmatprep.subr.mxu1 %v1085_v0  ;;  %v662_v16 = vld [vmem:[#allocation8 + $0x28] sm:$0xff] }
  0x7a   :  { %556 = vmatpush1.msra.mxu0 %v537_v17  ;;  %875 = vmatpush3.msra.mxu1 %v338_v58  ;;  %v661_v17 = vld [vmem:[#allocation8 + $0x20] sm:$0xff] }
  0x7b   :  { %557 = vmatprep.subr.mxu0 %v536_v18  ;;  %876 = vmatprep.subr.mxu1 %v1085_v0  ;;  %v660_v18 = vld [vmem:[#allocation8 + $0x18] sm:$0xff] }
  0x7c   :  { %558 = vmatpush1.msra.mxu0 %v535_v19  ;;  %877 = vmatpush3.msra.mxu1 %v335_v33  ;;  %v659_v19 = vld [vmem:[#allocation8 + $0x10] sm:$0xff] }
  0x7d   :  { %559 = vmatprep.subr.mxu0 %v534_v20  ;;  %878 = vmatprep.subr.mxu1 %v1085_v0  ;;  %v658_v20 = vld [vmem:[#allocation8 + $0x8] sm:$0xff] }
  0x7e   :  { %560 = vmatpush1.msra.mxu0 %v533_v21  ;;  %879 = vmatpush3.msra.mxu1 %v332_v59  ;;  %v657_v21 = vld [vmem:[#allocation8] sm:$0xff] }
  0x7f   :  { %561 = vmatprep.subr.mxu0 %v532_v22  ;;  %880 = vmatprep.subr.mxu1 %v1085_v0  ;;  %v147_v22 = vlaneseq }
  0x80   :  { %562 = vmatpush1.msra.mxu0 %v531_v23  ;;  %881 = vmatpush3.msra.mxu1 %v329_v60 }
  0x81   :  { %563 = vmatprep.subr.mxu0 %v530_v24  ;;  %882 = vmatprep.subr.mxu1 %v1085_v0  ;;  %v148_v24 = vshrl.u32 %v147_v22, 7 }
  0x82   :  { %564 = vmatpush1.msra.mxu0 %v529_v25  ;;  %883 = vmatpush3.msra.mxu1 %v326_v61 }
  0x83   :  { %565 = vmatprep.subr.mxu0 %v528_v26  ;;  %884 = vmatprep.subr.mxu1 %v1085_v0  ;;  %v145_v26 = vld [vmem:[%s1261_s7] sm:$0x7] }
  0x84   :  { %566 = vmatpush1.msra.mxu0 %v527_v27  ;;  %885 = vmatpush3.msra.mxu1 %v323_v62  ;;  %v149_v27 = vsub.s32 0, %v148_v24 }
  0x85   :  { %567 = vmatprep.subr.mxu0 %v526_v28  ;;  %886 = vmatprep.subr.mxu1 %v1085_v0  ;;  %v153_v28 = vsub.s32 1, %v148_v24 }
  0x86   :  { %568 = vmatpush1.msra.mxu0 %v525_v29  ;;  %887 = vmatpush3.msra.mxu1 %v320_v63  ;;  %v351_v29 = vld [vmem:[%s1262_s8] sm:$0x7] }
  0x87   :  { %569 = vmatprep.subr.mxu0 %v524_v30  ;;  %888 = vmatprep.subr.mxu1 %v1085_v0 }
  0x88   :  { %570 = vmatpush1.msra.mxu0 %v523_v31  ;;  %889 = vmatpush3.msra.mxu1 %v317_v1  ;;  %v150_v31 = vrot.slane %v145_v26, %v149_v27 }
  0x89   :  { %571 = vmatprep.subr.mxu0 %v522_v32  ;;  %890 = vmatprep.subr.mxu1 %v1085_v0  ;;  %v356_v32 = vrot.slane %v351_v29, %v149_v27 }
  0x8a   :  { %572 = vmatpush1.msra.mxu0 %v521_v34  ;;  %891 = vmatpush3.msra.mxu1 %v314_v2  ;;  %v157_v2 = vsub.s32 2, %v148_v24 }
  0x8b   :  { %573 = vmatprep.subr.mxu0 %v520_v35  ;;  %892 = vmatprep.subr.mxu1 %v1085_v0  ;;  %v154_v35 = vrot.slane %v145_v26, %v153_v28 }
  0x8c   :  { %574 = vmatpush1.msra.mxu0 %v519_v36  ;;  %893 = vmatpush3.msra.mxu1 %v311_v3 }
  0x8d   :  { %575 = vmatprep.subr.mxu0 %v518_v37  ;;  %894 = vmatprep.subr.mxu1 %v1085_v0  ;;  %v360_v37 = vrot.slane %v351_v29, %v153_v28 }
  0x8e   :  { %576 = vmatpush1.msra.mxu0 %v517_v38  ;;  %895 = vmatpush3.msra.mxu1 %v308_v4 }
  0x8f   :  { %577 = vmatprep.subr.mxu0 %v516_v39  ;;  %896 = vmatprep.subr.mxu1 %v1085_v0 }
  0x90   :  { %578 = vmatpush1.msra.mxu0 %v515_v40  ;;  %897 = vmatpush3.msra.mxu1 %v305_v5 }
  0x91   :  { %579 = vmatprep.subr.mxu0 %v514_v41  ;;  %899 = vmatmul.mubr.f32.vlgmr.msra.gmra.mxu1 %v1182_v13  ;;  %v665_v13 = vld [vmem:[#allocation8 + $0x40] sm:$0xff] }
  0x92   :  { %580 = vmatpush1.msra.mxu0 %v513_v42  ;;  %901 = vmatprep.subr.mxu1 %v1085_v0 }
  0x93   :  { %581 = vmatprep.subr.mxu0 %v512_v43  ;;  %933 = vmatprep.mubr.msk.f32.mxu1 %vm1086_vm0, %v1085_v0 }
  0x94   :  { %582 = vmatpush1.msra.mxu0 %v511_v44  ;;  %902 = vmatpush3.msra.mxu1 %v672_v6 }
  0x95   :  { %583 = vmatprep.subr.mxu0 %v510_v45  ;;  %903 = vmatprep.subr.mxu1 %v1085_v0 }
  0x96   :  { %584 = vmatpush1.msra.mxu0 %v509_v46  ;;  %904 = vmatpush3.msra.mxu1 %v671_v7 }
  0x97   :  { %618 = vmatmul.mubr.f32.vlgmr.msra.gmra.mxu0 %v1189_v47  ;;  %905 = vmatprep.subr.mxu1 %v1085_v0 }
  0x98   :  { %906 = vmatpush3.msra.mxu1 %v670_v8  ;;  %v158_v8 = vrot.slane %v145_v26, %v157_v2 }
  0x99   :  { %907 = vmatprep.subr.mxu1 %v1085_v0 }
  0x9a   :  { %908 = vmatpush3.msra.mxu1 %v669_v9 }
  0x9b   :  { %909 = vmatprep.subr.mxu1 %v1085_v0 }
  0x9c   :  { %910 = vmatpush3.msra.mxu1 %v668_v10 }
  0x9d   :  { %911 = vmatprep.subr.mxu1 %v1085_v0 }
  0x9e   :  { %912 = vmatpush3.msra.mxu1 %v667_v11  ;;  %v364_v11 = vrot.slane %v351_v29, %v157_v2 }
  0x9f   :  { %913 = vmatprep.subr.mxu1 %v1085_v0 }
  0xa0   :  { %914 = vmatpush3.msra.mxu1 %v666_v12 }
  0xa1   :  { %915 = vmatprep.subr.mxu1 %v1085_v0 }
  0xa2   :  { %916 = vmatpush3.msra.mxu1 %v665_v13 }
  0xa3   :  { %917 = vmatprep.subr.mxu1 %v1085_v0 }
  0xa4   :  { %918 = vmatpush3.msra.mxu1 %v664_v14 }
  0xa5   :  { %919 = vmatprep.subr.mxu1 %v1085_v0 }
  0xa6   :  { %920 = vmatpush3.msra.mxu1 %v663_v15 }
  0xa7   :  { %921 = vmatprep.subr.mxu1 %v1085_v0 }
  0xa8   :  { %922 = vmatpush3.msra.mxu1 %v662_v16 }
  0xa9   :  { %923 = vmatprep.subr.mxu1 %v1085_v0 }
  0xaa   :  { %924 = vmatpush3.msra.mxu1 %v661_v17 }
  0xab   :  { %925 = vmatprep.subr.mxu1 %v1085_v0 }
  0xac   :  { %926 = vmatpush3.msra.mxu1 %v660_v18  ;;  %v779_v18 = vld [vmem:[%s1264_s10] ss:$0 sm:$0xff] }
  0xad   :  { %927 = vmatprep.subr.mxu1 %v1085_v0 }
  0xae   :  { %928 = vmatpush3.msra.mxu1 %v659_v19 }
  0xaf   :  { %929 = vmatprep.subr.mxu1 %v1085_v0 }
  0xb0   :  { %930 = vmatpush3.msra.mxu1 %v658_v20 }
  0xb1   :  { %931 = vmatprep.subr.mxu1 %v1085_v0  ;;  %v541_v0 = vld [vmem:[%s1263_s9] sm:$0x3]  ;;  %s1087_s9 = smov [#allocation10]  }
  0xb2   :  { %932 = vmatpush3.msra.mxu1 %v657_v21  ;;  %v546_v34 = vrot.slane %v541_v0, %v149_v27  ;;  %v550_v38 = vrot.slane %v541_v0, %v153_v28  ;;  %s764_s29 = sshll.u32 %s1087_s9, 4  ;;  %s765_s29 = int_to_ptr.vmem [resolvable:$true] %s764_s29 }
  0xb3   :  { %s1047_s30 = scalar_lea.vmem %s765_s29, 128  ;;  %p1052_p7 = scmp.lt.s32.totalorder %s765_s29, %s765_s29 }
  0xb4   :  { %p1048_p6 = scmp.ne.s32.totalorder %s765_s29, %s1047_s30  ;;  %p1053_p8 = scmp.lt.s32.totalorder %s1047_s30, %s1047_s30 }
  0xb6   :  { %p1054_p9 = por %p1053_p8, %p1052_p7 }
  0xb8   :  { %p1055_p10 = pnand %p1054_p9, %p1048_p6 }
 0x117   :  { %v228_v23 = vpop.f32.mrf.mxu0 }
 0x118   :  { %v229_v40 = vadd.f32 %v228_v23, %v150_v31 }
 0x119   :  { %v230_v25 = vpop.f32.mrf.mxu0 }
 0x11a   :  { %v231_v43 = vadd.f32 %v230_v25, %v154_v35 }
 0x12e   :  { %v299_v56 = vpop.f32.mrf.mxu1 }
 0x12f   :  { %v300_v13 = vadd.f32 %v299_v56, %v158_v8 }
 0x130   :  { %v865_v57 = vpop.f32.mrf.mxu1 }
 0x137   :  { %v434_v30 = vpop.f32.mrf.mxu0 }
 0x138   :  { %v435_v41 = vadd.f32 %v434_v30, %v356_v32 }
 0x139   :  { %v436_v36 = vpop.f32.mrf.mxu0 }
 0x13a   :  { %v437_v45 = vadd.f32 %v436_v36, %v360_v37 }
 0x151   :  { %v505_v14 = vpop.f32.mrf.mxu1 }
 0x152   :  { %v506_v15 = vadd.f32 %v505_v14, %v364_v11 }
 0x153   :  { %v900_v16 = vpop.f32.mrf.mxu1 }
 0x154   :  { %v750_v17 = vadd.f32 %v506_v15, %v300_v13 }
 0x157   :  { %v619_v39 = vpop.f32.mrf.mxu0 }
 0x158   :  { %v620_v42 = vadd.f32 %v619_v39, %v546_v34 }
 0x159   :  { %v621_v44 = vpop.f32.mrf.mxu0 }
 0x15a   :  { %v624_v46 = vadd.f32 %v620_v42, %v229_v40  ;;  %v631_v48 = vadd.f32 %v620_v42, %v435_v41  ;;  %v622_v49 = vadd.f32 %v621_v44, %v550_v38 }
 0x15c   :  { %v775_v50 = vmul.f32 -1.442695, %v624_v46  ;;  %v776_v51 = vmul.f32 -1.442695, %v631_v48  ;;  %v640_v52 = vadd.f32 %v622_v49, %v231_v43  ;;  %v647_v53 = vadd.f32 %v622_v49, %v437_v45 }
 0x15e   :  { %949 = vpow2.f32 %v775_v50  ;;  %v777_v54 = vmul.f32 -1.442695, %v640_v52  ;;  %v778_v55 = vmul.f32 -1.442695, %v647_v53 }
 0x15f   :  { %951 = vpow2.f32 %v776_v51 }
 0x160   :  { %953 = vpow2.f32 %v777_v54 }
 0x161   :  { %955 = vpow2.f32 %v778_v55 }
 0x16b   :  { %v950_v58 = vpop.eup %949 }
 0x16c   :  { %v952_v33 = vpop.eup %951  ;;  %v628_v59 = vadd.f32 1.0, %v950_v58 }
 0x16d   :  { %v954_v60 = vpop.eup %953  ;;  %v635_v61 = vadd.f32 1.0, %v952_v33 }
 0x16e   :  { %v956_v62 = vpop.eup %955  ;;  %957 = vrcp.f32 %v628_v59  ;;  %v644_v63 = vadd.f32 1.0, %v954_v60 }
 0x16f   :  { %959 = vrcp.f32 %v635_v61  ;;  %v651_v1 = vadd.f32 1.0, %v956_v62 }
 0x170   :  { %961 = vrcp.f32 %v644_v63 }
 0x171   :  { %963 = vrcp.f32 %v651_v1 }
 0x17b   :  { %v958_v3 = vpop.eup %957 }
 0x17c   :  { %v960_v4 = vpop.eup %959 }
 0x17d   :  { %v962_v5 = vpop.eup %961  ;;  %v638_v6 = vadd.f32 %v960_v4, %v958_v3 }
 0x17e   :  { %v964_v7 = vpop.eup %963 }
 0x17f   :  { %v639_v9 = vmul.f32 0.5, %v638_v6  ;;  %v654_v10 = vadd.f32 %v964_v7, %v962_v5 }
 0x181   :  { %v656_v12 = vmul.f32 %v639_v9, %v1189_v47  ;;  %v655_v23 = vmul.f32 0.5, %v654_v10 }
 0x183   :  { %934 = vmatmul.mubr.f32.vlgmr.msra.gmra.mxu1 %v656_v12  ;;  %v753_v24 = vsub.f32 1.0, %v655_v23  ;;  %v755_v27 = vmul.f32 %v655_v23, %v1189_v47 }
 0x243   :  { %v746_v19 = vpop.f32.mrf.mxu1 }
 0x244   :  { %v747_v20 = vadd.f32 %v779_v18, %v746_v19 }
 0x245   :  { %v935_v21 = vpop.f32.mrf.mxu1 }
 0x246   :  { %v751_v22 = vadd.f32 %v750_v17, %v747_v20 }
 0x248   :  { %965 = vtanh.f32 %v751_v22 }
 0x255   :  { %v966_v25 = vpop.eup %965 }
 0x256   :  { %v754_v26 = vmul.f32 %v966_v25, %v753_v24 }
 0x258   :  { %v756_v28 = vadd.f32 %v755_v27, %v754_v26 }
 0x25a   :  { %757 = vst [vmem:[#allocation10] sm:$0xff] %v756_v28 }
 0x25b   :  { %1058 = shalt.err (!%p1055_p10)
}
 0x25c   :  { %767 = dma.vmem_to_hbm [thread:$0]  %s765_s29, 128, %s1265_s11, [#allocation4]  }
 0x25d   :  { %1073 = dma.done.wait [#allocation4], 128  }
 0x25e   :  { %1074 = vsyncadd [#allocation4], 4294967168 }
 0x25f   :  { %771 = vsyncpa [#allocation3], 1 }
 0x260   :  { %772 = vsyncpa [#allocation6], 1 }
 0x261   :  { %773 = vsyncpa [#allocation9], 1 }
 0x262   :  { %774 = vsyncpa [#allocation4], 1 }

</bundles_post_ra>
